<compile_context>
chip_gen: v7x
topology: tpu7x:2x2x1
jax: 0.10.0
libtpu: 0.0.40
codegen_flags: <defaults>
</compile_context>

<pallas_src>
import functools

import jax
import jax.numpy as jnp
import numpy as np
from jax.experimental import pallas as pl
from jax.experimental.pallas import tpu as pltpu  # noqa: F401  (not needed: no grid / no scratch)


# ----------------------- fused attention + MLP kernel ------------------------
def _fused_attention_mlp_kernel(b, h, n, c, scale,
                                q_ref, k_ref, v_ref, pe_ref,
                                w1_ref, b1_ref, w2_ref, b2_ref,
                                o_ref):
    D = h * c
    bh = b * h

    # ---- attention, batched over the fused (b*h) axis ----------------------
    # Leading-dim merges only (last two dims untouched) -> layout no-ops.
    q = q_ref[...].reshape(bh, n, c)
    k = k_ref[...].reshape(bh, n, c)
    v = v_ref[...].reshape(bh, n, c)
    pe = pe_ref[...].reshape(bh, n, n)

    # q @ k^T without an explicit transpose: contract the channel dims.
    s = jnp.einsum("znc,zmc->znm", q, k,
                   preferred_element_type=jnp.float32) * scale        # (bh,n,n)

    # numerically-stable softmax along last dim (exact normalization);
    # pe is added AFTER the softmax, as in the reference module.
    s = s - jnp.max(s, axis=-1, keepdims=True)
    p = jnp.exp(s)
    attn = p / jnp.sum(p, axis=-1, keepdims=True) + pe                # (bh,n,n)

    atv = jnp.einsum("znm,zmc->znc", attn, v,
                     preferred_element_type=jnp.float32)              # (bh,n,c)

    # ---- permute(0,2,1,3).reshape(b,n,h*c) + Mlp, without any lane concat ---
    #   (concat_h atv[b,h,n,:]) @ W1  ==  sum_h  atv[b,h,n,:] @ W1[h*c:(h+1)*c, :]
    atv4 = atv.reshape(b, h, n, c)
    h1 = b1_ref[...]                                                  # (1, D), broadcast over rows
    for hh in range(h):                                               # static unroll, h is small
        x_h = atv4[:, hh, :, :].reshape(b * n, c)                     # (b*n, c), rows in (b, n) order
        w_h = w1_ref[hh * c:(hh + 1) * c, :]                          # (c, D) slice of fc1 weight
        h1 = h1 + jnp.dot(x_h, w_h, preferred_element_type=jnp.float32)

    h1 = h1 * jax.nn.sigmoid(h1)                                      # SiLU
    y = jnp.dot(h1, w2_ref[...],
                preferred_element_type=jnp.float32) + b2_ref[...]     # (b*n, D)
    o_ref[...] = y.reshape(b, n, D).astype(o_ref.dtype)


def attention_forward(q, k, v, pe, w1, b1, w2, b2):
    b, h, n, c = q.shape
    D = h * c
    scale = float(c) ** (-0.5)

    kernel = functools.partial(_fused_attention_mlp_kernel, b, h, n, c, scale)

    # Single invocation (no grid): all operands fully resident in VMEM,
    # weights DMA'd once, output written as a lane-dense (b, n, D=128) slab.
    return pl.pallas_call(
        kernel,
        out_shape=jax.ShapeDtypeStruct((b, n, D), q.dtype),
    )(q, k, v, pe, w1, b1.reshape(1, D), w2, b2.reshape(1, D))


# ------------------------------ pure-JAX reference ---------------------------
def reference_forward(q, k, v, pe, w1, b1, w2, b2):
    b, h, n, c = q.shape
    scale = float(c) ** (-0.5)
    kt = jnp.swapaxes(k, -1, -2)
    attn_score = pe + jax.nn.softmax(
        jnp.einsum("bhnc,bhcm->bhnm", q, kt) * scale, axis=-1)
    atten = jnp.einsum("bhnm,bhmc->bhnc", attn_score, v)
    out = jnp.transpose(atten, (0, 2, 1, 3)).reshape(b, n, h * c)
    hdn = out @ w1 + b1
    hdn = hdn * jax.nn.sigmoid(hdn)
    return hdn @ w2 + b2


if __name__ == "__main__":
    b, h, n, c = 2, 4, 8, 32
    D = h * c  # 128

    key = jax.random.PRNGKey(0)
    kq, kk, kv, kpe, kw1, kb1, kw2, kb2 = jax.random.split(key, 8)

    q = jax.random.normal(kq, (b, h, n, c), dtype=jnp.float32)
    k = jax.random.normal(kk, (b, h, n, c), dtype=jnp.float32)
    v = jax.random.normal(kv, (b, h, n, c), dtype=jnp.float32)
    pe = jax.random.normal(kpe, (b, h, n, n), dtype=jnp.float32) * 0.1

    # Mlp(h*c) parameters: Linear(D->D), SiLU, Linear(D->D). Stored (in, out).
    w1 = jax.random.normal(kw1, (D, D), dtype=jnp.float32) * (1.0 / np.sqrt(D))
    b1 = jax.random.normal(kb1, (D,), dtype=jnp.float32) * 0.01
    w2 = jax.random.normal(kw2, (D, D), dtype=jnp.float32) * (1.0 / np.sqrt(D))
    b2 = jax.random.normal(kb2, (D,), dtype=jnp.float32) * 0.01

    out = attention_forward(q, k, v, pe, w1, b1, w2, b2)
    out = jax.block_until_ready(out)

    ref = reference_forward(q, k, v, pe, w1, b1, w2, b2)
    # Exact softmax normalization (no approx reciprocal) -> tight f32 agreement;
    # remaining slack is only MXU vs XLA accumulation order.
    np.testing.assert_allclose(np.asarray(out), np.asarray(ref),
                               rtol=1e-4, atol=1e-4)

    print("KERNEL_OK")
</pallas_src>

<mosaic_0001>
module attributes {stable_mosaic.version = 11 : i64} {
  func.func @_fused_attention_mlp_kernel(%arg0: memref<2x4x8x32xf32, #tpu.memory_space<vmem>>, %arg1: memref<2x4x8x32xf32, #tpu.memory_space<vmem>>, %arg2: memref<2x4x8x32xf32, #tpu.memory_space<vmem>>, %arg3: memref<2x4x8x8xf32, #tpu.memory_space<vmem>>, %arg4: memref<128x128xf32, #tpu.memory_space<vmem>>, %arg5: memref<1x128xf32, #tpu.memory_space<vmem>>, %arg6: memref<128x128xf32, #tpu.memory_space<vmem>>, %arg7: memref<1x128xf32, #tpu.memory_space<vmem>>, %arg8: memref<2x8x128xf32, #tpu.memory_space<vmem>>) attributes {dimension_semantics = [], scalar_prefetch = 0 : i64, scratch_operands = 0 : i64, tpu.core_type = #tpu.core_type<tc>} {
    %c0 = arith.constant 0 : index
    %c0_0 = arith.constant 0 : index
    %c0_1 = arith.constant 0 : index
    %c0_2 = arith.constant 0 : index
    %0 = vector.load %arg0[%c0, %c0_0, %c0_1, %c0_2] : memref<2x4x8x32xf32, #tpu.memory_space<vmem>>, vector<2x4x8x32xf32>
    %1 = vector.shape_cast %0 : vector<2x4x8x32xf32> to vector<8x8x32xf32>
    %c0_3 = arith.constant 0 : index
    %c0_4 = arith.constant 0 : index
    %c0_5 = arith.constant 0 : index
    %c0_6 = arith.constant 0 : index
    %2 = vector.load %arg1[%c0_3, %c0_4, %c0_5, %c0_6] : memref<2x4x8x32xf32, #tpu.memory_space<vmem>>, vector<2x4x8x32xf32>
    %3 = vector.shape_cast %2 : vector<2x4x8x32xf32> to vector<8x8x32xf32>
    %c0_7 = arith.constant 0 : index
    %c0_8 = arith.constant 0 : index
    %c0_9 = arith.constant 0 : index
    %c0_10 = arith.constant 0 : index
    %4 = vector.load %arg2[%c0_7, %c0_8, %c0_9, %c0_10] : memref<2x4x8x32xf32, #tpu.memory_space<vmem>>, vector<2x4x8x32xf32>
    %5 = vector.shape_cast %4 : vector<2x4x8x32xf32> to vector<8x8x32xf32>
    %c0_11 = arith.constant 0 : index
    %c0_12 = arith.constant 0 : index
    %c0_13 = arith.constant 0 : index
    %c0_14 = arith.constant 0 : index
    %6 = vector.load %arg3[%c0_11, %c0_12, %c0_13, %c0_14] : memref<2x4x8x8xf32, #tpu.memory_space<vmem>>, vector<2x4x8x8xf32>
    %7 = vector.shape_cast %6 : vector<2x4x8x8xf32> to vector<8x8x8xf32>
    "tpu.trace_start"() <{level = 10 : i32, message = "znc,zmc->znm"}> : () -> ()
    %cst = arith.constant dense<0.000000e+00> : vector<8x8x8xf32>
    %8 = tpu.matmul %1, %3, %cst {dimension_numbers = #tpu.dot_dimension_numbers<[2], [2], [1], [1], [0, 0, 0, 1, 1, 1], [0], [0]>} : vector<8x8x32xf32>, vector<8x8x32xf32>, vector<8x8x8xf32> -> vector<8x8x8xf32>
    "tpu.trace_stop"() : () -> ()
    %cst_15 = arith.constant 0.176776692 : f32
    %9 = vector.broadcast %cst_15 : f32 to vector<8x8x8xf32>
    %10 = arith.mulf %8, %9 : vector<8x8x8xf32>
    %cst_16 = arith.constant dense<0xFF800000> : vector<8x8xf32>
    %11 = vector.multi_reduction <maximumf>, %10, %cst_16 [2] : vector<8x8x8xf32> to vector<8x8xf32>
    %12 = vector.shape_cast %11 : vector<8x8xf32> to vector<8x8x1xf32>
    %13 = vector.broadcast %12 : vector<8x8x1xf32> to vector<8x8x8xf32>
    %14 = arith.subf %10, %13 : vector<8x8x8xf32>
    %15 = math.exp %14 : vector<8x8x8xf32>
    %cst_17 = arith.constant dense<0.000000e+00> : vector<8x8xf32>
    %16 = vector.multi_reduction <add>, %15, %cst_17 [2] : vector<8x8x8xf32> to vector<8x8xf32>
    %17 = vector.shape_cast %16 : vector<8x8xf32> to vector<8x8x1xf32>
    %18 = vector.broadcast %17 : vector<8x8x1xf32> to vector<8x8x8xf32>
    %19 = arith.divf %15, %18 : vector<8x8x8xf32>
    %20 = arith.addf %19, %7 : vector<8x8x8xf32>
    "tpu.trace_start"() <{level = 10 : i32, message = "znm,zmc->znc"}> : () -> ()
    %cst_18 = arith.constant dense<0.000000e+00> : vector<8x8x32xf32>
    %21 = tpu.matmul %20, %5, %cst_18 {dimension_numbers = #tpu.dot_dimension_numbers<[2], [1], [1], [2], [0, 0, 0, 1, 1, 2], [0], [0]>} : vector<8x8x8xf32>, vector<8x8x32xf32>, vector<8x8x32xf32> -> vector<8x8x32xf32>
    "tpu.trace_stop"() : () -> ()
    %22 = vector.shape_cast %21 : vector<8x8x32xf32> to vector<2x4x8x32xf32>
    %c0_19 = arith.constant 0 : index
    %c0_20 = arith.constant 0 : index
    %23 = vector.load %arg5[%c0_19, %c0_20] : memref<1x128xf32, #tpu.memory_space<vmem>>, vector<1x128xf32>
    %24 = vector.extract_strided_slice %22 {offsets = [0, 0, 0, 0], sizes = [2, 1, 8, 32], strides = [1, 1, 1, 1]} : vector<2x4x8x32xf32> to vector<2x1x8x32xf32>
    %25 = vector.shape_cast %24 : vector<2x1x8x32xf32> to vector<2x8x32xf32>
    %26 = vector.shape_cast %25 : vector<2x8x32xf32> to vector<16x32xf32>
    %c0_21 = arith.constant 0 : index
    %c0_22 = arith.constant 0 : index
    %27 = vector.load %arg4[%c0_21, %c0_22] : memref<128x128xf32, #tpu.memory_space<vmem>>, vector<32x128xf32>
    %cst_23 = arith.constant dense<0.000000e+00> : vector<16x128xf32>
    %28 = tpu.matmul %26, %27, %cst_23 {dimension_numbers = #tpu.dot_dimension_numbers<[1], [0], [0], [1], [0, 0, 1, 1], [], []>} : vector<16x32xf32>, vector<32x128xf32>, vector<16x128xf32> -> vector<16x128xf32>
    %29 = vector.broadcast %23 : vector<1x128xf32> to vector<16x128xf32>
    %30 = arith.addf %29, %28 : vector<16x128xf32>
    %31 = vector.extract_strided_slice %22 {offsets = [0, 1, 0, 0], sizes = [2, 1, 8, 32], strides = [1, 1, 1, 1]} : vector<2x4x8x32xf32> to vector<2x1x8x32xf32>
    %32 = vector.shape_cast %31 : vector<2x1x8x32xf32> to vector<2x8x32xf32>
    %33 = vector.shape_cast %32 : vector<2x8x32xf32> to vector<16x32xf32>
    %c32 = arith.constant 32 : index
    %c0_24 = arith.constant 0 : index
    %34 = vector.load %arg4[%c32, %c0_24] : memref<128x128xf32, #tpu.memory_space<vmem>>, vector<32x128xf32>
    %cst_25 = arith.constant dense<0.000000e+00> : vector<16x128xf32>
    %35 = tpu.matmul %33, %34, %cst_25 {dimension_numbers = #tpu.dot_dimension_numbers<[1], [0], [0], [1], [0, 0, 1, 1], [], []>} : vector<16x32xf32>, vector<32x128xf32>, vector<16x128xf32> -> vector<16x128xf32>
    %36 = arith.addf %30, %35 : vector<16x128xf32>
    %37 = vector.extract_strided_slice %22 {offsets = [0, 2, 0, 0], sizes = [2, 1, 8, 32], strides = [1, 1, 1, 1]} : vector<2x4x8x32xf32> to vector<2x1x8x32xf32>
    %38 = vector.shape_cast %37 : vector<2x1x8x32xf32> to vector<2x8x32xf32>
    %39 = vector.shape_cast %38 : vector<2x8x32xf32> to vector<16x32xf32>
    %c64 = arith.constant 64 : index
    %c0_26 = arith.constant 0 : index
    %40 = vector.load %arg4[%c64, %c0_26] : memref<128x128xf32, #tpu.memory_space<vmem>>, vector<32x128xf32>
    %cst_27 = arith.constant dense<0.000000e+00> : vector<16x128xf32>
    %41 = tpu.matmul %39, %40, %cst_27 {dimension_numbers = #tpu.dot_dimension_numbers<[1], [0], [0], [1], [0, 0, 1, 1], [], []>} : vector<16x32xf32>, vector<32x128xf32>, vector<16x128xf32> -> vector<16x128xf32>
    %42 = arith.addf %36, %41 : vector<16x128xf32>
    %43 = vector.extract_strided_slice %22 {offsets = [0, 3, 0, 0], sizes = [2, 1, 8, 32], strides = [1, 1, 1, 1]} : vector<2x4x8x32xf32> to vector<2x1x8x32xf32>
    %44 = vector.shape_cast %43 : vector<2x1x8x32xf32> to vector<2x8x32xf32>
    %45 = vector.shape_cast %44 : vector<2x8x32xf32> to vector<16x32xf32>
    %c96 = arith.constant 96 : index
    %c0_28 = arith.constant 0 : index
    %46 = vector.load %arg4[%c96, %c0_28] : memref<128x128xf32, #tpu.memory_space<vmem>>, vector<32x128xf32>
    %cst_29 = arith.constant dense<0.000000e+00> : vector<16x128xf32>
    %47 = tpu.matmul %45, %46, %cst_29 {dimension_numbers = #tpu.dot_dimension_numbers<[1], [0], [0], [1], [0, 0, 1, 1], [], []>} : vector<16x32xf32>, vector<32x128xf32>, vector<16x128xf32> -> vector<16x128xf32>
    %48 = arith.addf %42, %47 : vector<16x128xf32>
    %49 = arith.negf %48 : vector<16x128xf32>
    %50 = math.exp %49 : vector<16x128xf32>
    %cst_30 = arith.constant 1.000000e+00 : f32
    %51 = vector.broadcast %cst_30 : f32 to vector<16x128xf32>
    %52 = arith.addf %51, %50 : vector<16x128xf32>
    %53 = arith.divf %51, %52 : vector<16x128xf32>
    %54 = arith.mulf %48, %53 : vector<16x128xf32>
    %c0_31 = arith.constant 0 : index
    %c0_32 = arith.constant 0 : index
    %55 = vector.load %arg6[%c0_31, %c0_32] : memref<128x128xf32, #tpu.memory_space<vmem>>, vector<128x128xf32>
    %cst_33 = arith.constant dense<0.000000e+00> : vector<16x128xf32>
    %56 = tpu.matmul %54, %55, %cst_33 {dimension_numbers = #tpu.dot_dimension_numbers<[1], [0], [0], [1], [0, 0, 1, 1], [], []>} : vector<16x128xf32>, vector<128x128xf32>, vector<16x128xf32> -> vector<16x128xf32>
    %c0_34 = arith.constant 0 : index
    %c0_35 = arith.constant 0 : index
    %57 = vector.load %arg7[%c0_34, %c0_35] : memref<1x128xf32, #tpu.memory_space<vmem>>, vector<1x128xf32>
    %58 = vector.broadcast %57 : vector<1x128xf32> to vector<16x128xf32>
    %59 = arith.addf %56, %58 : vector<16x128xf32>
    %60 = vector.shape_cast %59 : vector<16x128xf32> to vector<2x8x128xf32>
    %c0_36 = arith.constant 0 : index
    %c0_37 = arith.constant 0 : index
    %c0_38 = arith.constant 0 : index
    %61 = vector.load %arg8[%c0_36, %c0_37, %c0_38] : memref<2x8x128xf32, #tpu.memory_space<vmem>>, vector<2x8x128xf32>
    tpu.vector_store %arg8[%c0_36, %c0_37, %c0_38], %60 {strides = array<i32>} : memref<2x8x128xf32, #tpu.memory_space<vmem>>, vector<2x8x128xf32>,
    return
  }
}

</mosaic_0001>

<bundles_post_ra>
// kernel: tpu_custom_call.1
= control target key start
LH: loop header
LB: loop body
LE: loop exit
PB: predicated region body
PF: predicated region fallthrough
CT: control target
= control target key end

     0   :  { %13 = vsyncpa [#allocation3], 0  ;;  %s2787_s0 = inlined_call_operand.hbm [shape: f32[2,4,8,32], index: 0, kind: input, shape index: {}]   ;;  %s2788_s1 = inlined_call_operand.hbm [shape: f32[2,4,8,32], index: 1, kind: input, shape index: {}]   ;;  %s2789_s2 = inlined_call_operand.hbm [shape: f32[2,4,8,32], index: 2, kind: input, shape index: {}]   ;;  %s2790_s3 = inlined_call_operand.hbm [shape: f32[2,4,8,8], index: 3, kind: input, shape index: {}]   ;;  %s2791_s4 = inlined_call_operand.hbm [shape: f32[128,128], index: 4, kind: input, shape index: {}]   ;;  %s2792_s5 = inlined_call_operand.vmem [shape: f32[1,128], index: 5, kind: input, shape index: {}]   ;;  %s2793_s6 = inlined_call_operand.hbm [shape: f32[128,128], index: 6, kind: input, shape index: {}]   ;;  %s2794_s7 = inlined_call_operand.vmem [shape: f32[1,128], index: 7, kind: input, shape index: {}]   ;;  %s2795_s8 = inlined_call_operand.hbm [shape: f32[2,8,128], index: 8, kind: output, shape index: {}]  }
   0x1   :  { %14 = vsyncpa [#allocation6], 0 }
   0x2   :  { %15 = vsyncpa [#allocation9], 0 }
   0x3   :  { %16 = vsyncpa [#allocation12], 0 }
   0x4   :  { %17 = vsyncpa [#allocation4], 0  ;;  %s2487_s27 = smov [#allocation5]   ;;  %s2488_s29 = smov [#allocation8]  }
   0x5   :  { %s35_s28 = sshll.u32 %s2487_s27, 4  ;;  %s59_s30 = sshll.u32 %s2488_s29, 4  ;;  %s36_s28 = int_to_ptr.vmem [resolvable:$true] %s35_s28  ;;  %s2543_s30 = int_to_ptr.vmem [resolvable:$true] %s59_s30 }
   0x6   :  { %s2323_s11 = scalar_lea.hbm %s2788_s1, 1024 }
   0x7   :  { %p2324_p0 = scmp.ne.s32.totalorder %s2788_s1, %s2323_s11  ;;  %p2327_p1 = scmp.lt.u32.totalorder %s2323_s11, %s2788_s1 }
   0x9   :  { %p2329_p2 = pnand %p2327_p1, %p2324_p0 }
   0xb   :  { %2332 = shalt.err (!%p2329_p2)
}
   0xc   :  { %s2333_s16 = scalar_lea.vmem %s36_s28, 1024  ;;  %p2338_p4 = scmp.lt.s32.totalorder %s36_s28, %s36_s28 }
   0xd   :  { %p2334_p3 = scmp.ne.s32.totalorder %s36_s28, %s2333_s16  ;;  %p2339_p5 = scmp.lt.s32.totalorder %s2333_s16, %s2333_s16 }
   0xf   :  { %p2340_p6 = por %p2339_p5, %p2338_p4 }
  0x11   :  { %p2341_p7 = pnand %p2340_p6, %p2334_p3 }
  0x13   :  { %2344 = shalt.err (!%p2341_p7)
}
  0x14   :  { %s2489_s17 = smov 128   ;;  %s2490_s18 = smov 8  }
  0x15   :  { %41 = dma.hbm_to_vmem [thread:$0]  %s2788_s1, 1024, %s36_s28, [#allocation6], %s2489_s17, %s2489_s17, %s2490_s18  }
  0x16   :  { %s2345_s23 = scalar_lea.hbm %s2790_s3, 1024 }
  0x17   :  { %p2346_p8 = scmp.ne.s32.totalorder %s2790_s3, %s2345_s23  ;;  %p2349_p9 = scmp.lt.u32.totalorder %s2345_s23, %s2790_s3 }
  0x19   :  { %p2351_p10 = pnand %p2349_p9, %p2346_p8 }
  0x1b   :  { %2354 = shalt.err (!%p2351_p10)
}
  0x1c   :  { %s2355_s29 = scalar_lea.vmem %s2543_s30, 1024  ;;  %p2360_p12 = scmp.lt.s32.totalorder %s2543_s30, %s2543_s30 }
  0x1d   :  { %p2356_p11 = scmp.ne.s32.totalorder %s2543_s30, %s2355_s29  ;;  %p2361_p13 = scmp.lt.s32.totalorder %s2355_s29, %s2355_s29 }
  0x1f   :  { %p2362_p0 = por %p2361_p13, %p2360_p12 }
  0x21   :  { %p2363_p1 = pnand %p2362_p0, %p2356_p11 }
  0x23   :  { %2366 = shalt.err (!%p2363_p1)
}
  0x24   :  { %65 = dma.hbm_to_vmem [thread:$0]  %s2790_s3, 1024, %s2543_s30, [#allocation9], %s2489_s17, %s2489_s17, %s2490_s18  }
  0x25   :  { %s2491_s9 = smov [#allocation2]   ;;  %s2492_s11 = smov [#allocation7]  }
  0x26   :  { %s23_s10 = sshll.u32 %s2491_s9, 4  ;;  %s47_s12 = sshll.u32 %s2492_s11, 4  ;;  %s24_s10 = int_to_ptr.vmem [resolvable:$true] %s23_s10  ;;  %s2580_s12 = int_to_ptr.vmem [resolvable:$true] %s47_s12 }
  0x27   :  { %s2367_s15 = scalar_lea.hbm %s2787_s0, 1024 }
  0x28   :  { %p2368_p2 = scmp.ne.s32.totalorder %s2787_s0, %s2367_s15  ;;  %p2371_p3 = scmp.lt.u32.totalorder %s2367_s15, %s2787_s0 }
  0x2a   :  { %p2373_p4 = pnand %p2371_p3, %p2368_p2 }
  0x2c   :  { %2376 = shalt.err (!%p2373_p4)
}
  0x2d   :  { %s2377_s3 = scalar_lea.vmem %s24_s10, 1024  ;;  %p2382_p6 = scmp.lt.s32.totalorder %s24_s10, %s24_s10 }
  0x2e   :  { %p2378_p5 = scmp.ne.s32.totalorder %s24_s10, %s2377_s3  ;;  %p2383_p7 = scmp.lt.s32.totalorder %s2377_s3, %s2377_s3 }
  0x30   :  { %p2384_p8 = por %p2383_p7, %p2382_p6 }
  0x32   :  { %p2385_p9 = pnand %p2384_p8, %p2378_p5 }
  0x34   :  { %2388 = shalt.err (!%p2385_p9)
}
  0x35   :  { %29 = dma.hbm_to_vmem [thread:$0]  %s2787_s0, 1024, %s24_s10, [#allocation3], %s2489_s17, %s2489_s17, %s2490_s18  }
  0x36   :  { %s2389_s25 = scalar_lea.hbm %s2789_s2, 1024 }
  0x37   :  { %p2390_p10 = scmp.ne.s32.totalorder %s2789_s2, %s2389_s25  ;;  %p2393_p11 = scmp.lt.u32.totalorder %s2389_s25, %s2789_s2 }
  0x39   :  { %p2395_p12 = pnand %p2393_p11, %p2390_p10 }
  0x3b   :  { %2398 = shalt.err (!%p2395_p12)
}
  0x3c   :  { %s2399_s28 = scalar_lea.vmem %s2580_s12, 1024  ;;  %p2404_p0 = scmp.lt.s32.totalorder %s2580_s12, %s2580_s12 }
  0x3d   :  { %p2400_p13 = scmp.ne.s32.totalorder %s2580_s12, %s2399_s28  ;;  %p2405_p1 = scmp.lt.s32.totalorder %s2399_s28, %s2399_s28 }
  0x3f   :  { %p2406_p2 = por %p2405_p1, %p2404_p0 }
  0x41   :  { %p2407_p3 = pnand %p2406_p2, %p2400_p13 }
  0x43   :  { %2410 = shalt.err (!%p2407_p3)
}
  0x44   :  { %53 = dma.hbm_to_vmem [thread:$0]  %s2789_s2, 1024, %s2580_s12, [#allocation6], %s2489_s17, %s2489_s17, %s2490_s18  }
  0x45   :  { %s2493_s10 = smov [#allocation10]   ;;  %s2494_s13 = smov [#allocation11]  }
  0x46   :  { %s71_s11 = sshll.u32 %s2493_s10, 4  ;;  %s85_s14 = sshll.u32 %s2494_s13, 4  ;;  %s72_s11 = int_to_ptr.vmem [resolvable:$true] %s71_s11  ;;  %s2617_s14 = int_to_ptr.vmem [resolvable:$true] %s85_s14 }
  0x47   :  { %s2411_s19 = scalar_lea.hbm %s2791_s4, 2048 }
  0x48   :  { %p2412_p4 = scmp.ne.s32.totalorder %s2791_s4, %s2411_s19  ;;  %p2415_p5 = scmp.lt.u32.totalorder %s2411_s19, %s2791_s4 }
  0x4a   :  { %p2417_p6 = pnand %p2415_p5, %p2412_p4 }
  0x4c   :  { %2420 = shalt.err (!%p2417_p6)
}
  0x4d   :  { %s2421_s2 = scalar_lea.vmem %s72_s11, 2048  ;;  %p2426_p8 = scmp.lt.s32.totalorder %s72_s11, %s72_s11 }
  0x4e   :  { %p2422_p7 = scmp.ne.s32.totalorder %s72_s11, %s2421_s2  ;;  %p2427_p9 = scmp.lt.s32.totalorder %s2421_s2, %s2421_s2 }
  0x50   :  { %p2428_p10 = por %p2427_p9, %p2426_p8 }
  0x52   :  { %p2429_p11 = pnand %p2428_p10, %p2422_p7 }
  0x54   :  { %2432 = shalt.err (!%p2429_p11)
}
  0x55   :  { %77 = dma.hbm_to_vmem [thread:$0]  %s2791_s4, 2048, %s72_s11, [#allocation9], %s2489_s17, %s2489_s17, %s2490_s18  }
  0x56   :  { %s2433_s25 = scalar_lea.hbm %s2793_s6, 2048 }
  0x57   :  { %p2434_p12 = scmp.ne.s32.totalorder %s2793_s6, %s2433_s25  ;;  %p2437_p13 = scmp.lt.u32.totalorder %s2433_s25, %s2793_s6 }
  0x59   :  { %p2439_p0 = pnand %p2437_p13, %p2434_p12 }
  0x5b   :  { %2442 = shalt.err (!%p2439_p0)
}
  0x5c   :  { %s2443_s28 = scalar_lea.vmem %s2617_s14, 2048  ;;  %p2448_p2 = scmp.lt.s32.totalorder %s2617_s14, %s2617_s14 }
  0x5d   :  { %p2444_p1 = scmp.ne.s32.totalorder %s2617_s14, %s2443_s28  ;;  %p2449_p3 = scmp.lt.s32.totalorder %s2443_s28, %s2443_s28 }
  0x5f   :  { %p2450_p4 = por %p2449_p3, %p2448_p2 }
  0x61   :  { %p2451_p5 = pnand %p2450_p4, %p2444_p1 }
  0x63   :  { %2454 = shalt.err (!%p2451_p5)
}
  0x64   :  { %91 = dma.hbm_to_vmem [thread:$0]  %s2793_s6, 2048, %s2617_s14, [#allocation12], %s2489_s17, %s2489_s17, %s2490_s18  }
  0x65   :  { %2477 = dma.done.wait [#allocation3], 1024  }
  0x66   :  { %2478 = vsyncadd [#allocation3], 4294966272 }
  0x67   :  { %2479 = dma.done.wait [#allocation6], 2048  }
  0x68   :  { %2480 = vsyncadd [#allocation6], 4294965248 }
  0x69   :  { %2481 = dma.done.wait [#allocation9], 3072  }
  0x6a   :  { %2482 = vsyncadd [#allocation9], 4294964224 }
  0x6b   :  { %2483 = dma.done.wait [#allocation12], 2048  }
  0x6c   :  { %2484 = vsyncadd [#allocation12], 4294965248  ;;  %v2495_v0 = vmov 0.0   ;;  %vm2496_vm0 = vmmov 0   ;;  %vm144_vm1 = vcmask 261120   ;;  %v120_v1 = vld [vmem:[#allocation5] sm:$0xff] }
  0x6d   :  { %2041 = vmatprep.subr.mxu0 %v2495_v0  ;;  %2046 = vmatprep.subr.mxu1 %v2495_v0  ;;  %v121_v2 = vld [vmem:[#allocation5 + $0x8] sm:$0xff]  ;;  %v112_v3 = vld [vmem:[#allocation2] sm:$0xff]  ;;  %v122_v5 = vld [vmem:[#allocation5 + $0x10] sm:$0xff]  ;;  %vm761_vm2 = vcmask 64512   ;;  %s2497_s11 = smov [#allocation13]  }
  0x6e   :  { %2043 = vmatprep.mubr.msk.f32.mxu0 %vm2496_vm0, %v2495_v0  ;;  %2048 = vmatprep.mubr.msk.f32.mxu1 %vm2496_vm0, %v2495_v0  ;;  %v113_v4 = vld [vmem:[#allocation2 + $0x8] sm:$0xff]  ;;  %v123_v6 = vld [vmem:[#allocation5 + $0x18] sm:$0xff]  ;;  %v114_v7 = vld [vmem:[#allocation2 + $0x10] sm:$0xff]  ;;  %s1916_s13 = sshll.u32 %s2497_s11, 4  ;;  %s1917_s13 = int_to_ptr.vmem [resolvable:$true] %s1916_s13 }
  0x6f   :  { %2042 = vmatpush3.xpose.msk.msra.mxu0 %vm144_vm1, %v120_v1  ;;  %2047 = vmatpush3.xpose.msk.msra.mxu1 %vm144_vm1, %v121_v2  ;;  %v124_v8 = vld [vmem:[#allocation5 + $0x20] sm:$0xff]  ;;  %v115_v9 = vld [vmem:[#allocation2 + $0x18] sm:$0xff]  ;;  %v125_v10 = vld [vmem:[#allocation5 + $0x28] sm:$0xff]  ;;  %s2455_s14 = scalar_lea.vmem %s1917_s13, 256  ;;  %p2460_p7 = scmp.lt.s32.totalorder %s1917_s13, %s1917_s13 }
  0x70   :  { %2051 = vmatprep.subr.mxu0 %v2495_v0  ;;  %2056 = vmatprep.subr.mxu1 %v2495_v0  ;;  %v116_v11 = vld [vmem:[#allocation2 + $0x20] sm:$0xff]  ;;  %v126_v12 = vld [vmem:[#allocation5 + $0x30] sm:$0xff]  ;;  %v117_v13 = vld [vmem:[#allocation2 + $0x28] sm:$0xff]  ;;  %p2456_p6 = scmp.ne.s32.totalorder %s1917_s13, %s2455_s14  ;;  %p2461_p8 = scmp.lt.s32.totalorder %s2455_s14, %s2455_s14 }
  0x71   :  { %v127_v14 = vld [vmem:[#allocation5 + $0x38] sm:$0xff]  ;;  %v118_v15 = vld [vmem:[#allocation2 + $0x30] sm:$0xff] }
  0x72   :  { %2044 = vmatmul.mubr.msk.f32.vlgmr.msra.gmra.mrb[0].mxu0 %vm144_vm1, %v112_v3  ;;  %2049 = vmatmul.mubr.msk.f32.vlgmr.msra.gmra.mrb[0].mxu1 %vm144_vm1, %v113_v4  ;;  %v119_v16 = vld [vmem:[#allocation2 + $0x38] sm:$0xff]  ;;  %p2462_p9 = por %p2461_p8, %p2460_p7 }
  0x73   :  { %2052 = vmatpush3.xpose.msk.msra.mxu0 %vm144_vm1, %v122_v5  ;;  %2053 = vmatprep.mubr.msk.f32.mxu0 %vm2496_vm0, %v2495_v0 }
  0x74   :  { %2061 = vmatprep.subr.mxu0 %v2495_v0  ;;  %2057 = vmatpush3.xpose.msk.msra.mxu1 %vm144_vm1, %v123_v6  ;;  %p2463_p10 = pnand %p2462_p9, %p2456_p6 }
  0x75   :  { %2058 = vmatprep.mubr.msk.f32.mxu1 %vm2496_vm0, %v2495_v0  ;;  %2066 = vmatprep.subr.mxu1 %v2495_v0 }
  0x76   :  { %2054 = vmatmul.mubr.msk.f32.vlgmr.msra.gmra.mrb[2].mxu0 %vm144_vm1, %v114_v7 }
  0x77   :  { %2062 = vmatpush3.xpose.msk.msra.mxu0 %vm144_vm1, %v124_v8  ;;  %2063 = vmatprep.mubr.msk.f32.mxu0 %vm2496_vm0, %v2495_v0 }
  0x78   :  { %2059 = vmatmul.mubr.msk.f32.vlgmr.msra.gmra.mrb[2].mxu1 %vm144_vm1, %v115_v9  ;;  %2071 = vmatprep.subr.mxu0 %v2495_v0 }
  0x79   :  { %2067 = vmatpush3.xpose.msk.msra.mxu1 %vm144_vm1, %v125_v10  ;;  %2068 = vmatprep.mubr.msk.f32.mxu1 %vm2496_vm0, %v2495_v0 }
  0x7a   :  { %2064 = vmatmul.mubr.msk.f32.vlgmr.msra.gmra.mrb[4].mxu0 %vm144_vm1, %v116_v11  ;;  %2076 = vmatprep.subr.mxu1 %v2495_v0 }
  0x7b   :  { %2072 = vmatpush3.xpose.msk.msra.mxu0 %vm144_vm1, %v126_v12  ;;  %2073 = vmatprep.mubr.msk.f32.mxu0 %vm2496_vm0, %v2495_v0 }
  0x7c   :  { %2069 = vmatmul.mubr.msk.f32.vlgmr.msra.gmra.mrb[4].mxu1 %vm144_vm1, %v117_v13  ;;  %2081 = vmatprep.subr.mxu0 %v2495_v0 }
  0x7d   :  { %2077 = vmatpush3.xpose.msk.msra.mxu1 %vm144_vm1, %v127_v14  ;;  %2078 = vmatprep.mubr.msk.f32.mxu1 %vm2496_vm0, %v2495_v0 }
  0x7e   :  { %2074 = vmatmul.mubr.msk.f32.vlgmr.msra.gmra.mrb[6].mxu0 %vm144_vm1, %v118_v15  ;;  %2086 = vmatprep.subr.mxu1 %v2495_v0 }
  0x7f   :  { %2083 = vmatprep.mubr.msk.f32.mxu0 %vm2496_vm0, %v2495_v0 }
  0x80   :  { %2079 = vmatmul.mubr.msk.f32.vlgmr.msra.gmra.mrb[6].mxu1 %vm144_vm1, %v119_v16 }
  0x81   :  { %2088 = vmatprep.mubr.msk.f32.mxu1 %vm2496_vm0, %v2495_v0 }
 0x145   :  { %v217_v17 = vpop.f32.mrb[0].mxu0  ;;  %v293_v18 = vpop.f32.mrb[0].mxu1 }
 0x146   :  { %v753_v19 = vmul.f32 0.17677669, %v217_v17  ;;  %v754_v20 = vmul.f32 0.17677669, %v293_v18  ;;  %v2045_v21 = vpop.f32.mrb[1].mxu0  ;;  %v2050_v22 = vpop.f32.mrb[1].mxu1 }
 0x148   :  { %v765_v23 = vsel %vm761_vm2, %v754_v20, -inf  ;;  %v762_v24 = vsel %vm761_vm2, %v753_v19, -inf }
 0x149   :  { %766 = vmax.xlane.f32.xlu1 %v765_v23  ;;  %763 = vmax.xlane.f32.xlu0 %v762_v24  ;;  %v369_v25 = vpop.f32.mrb[2].mxu0 }
 0x14a   :  { %v755_v26 = vmul.f32 0.17677669, %v369_v25  ;;  %v2055_v27 = vpop.f32.mrb[3].mxu0 }
 0x14b   :  { %v445_v28 = vpop.f32.mrb[2].mxu1  ;;  %v129_v27 = vld [vmem:[#allocation7 + $0x8] sm:$0xff] }
 0x14c   :  { %v756_v29 = vmul.f32 0.17677669, %v445_v28  ;;  %v768_v30 = vsel %vm761_vm2, %v755_v26, -inf  ;;  %v2060_v31 = vpop.f32.mrb[3].mxu1  ;;  %2087 = vmatpush3.msra.mxu1 %v129_v27 }
 0x14d   :  { %769 = vmax.xlane.f32.xlu0 %v768_v30  ;;  %v521_v32 = vpop.f32.mrb[4].mxu0  ;;  %2096 = vmatprep.subr.mxu1 %v2495_v0 }
 0x14e   :  { %v757_v33 = vmul.f32 0.17677669, %v521_v32  ;;  %v2065_v34 = vpop.f32.mrb[5].mxu0  ;;  %v771_v35 = vsel %vm761_vm2, %v756_v29, -inf }
 0x14f   :  { %v597_v36 = vpop.f32.mrb[4].mxu1  ;;  %v136_v34 = vld [vmem:[#allocation8] sm:$0xff] }
 0x150   :  { %v758_v37 = vmul.f32 0.17677669, %v597_v36  ;;  %v774_v38 = vsel %vm761_vm2, %v757_v33, -inf  ;;  %v2070_v39 = vpop.f32.mrb[5].mxu1 }
 0x151   :  { %772 = vmax.xlane.f32.xlu0 %v771_v35  ;;  %775 = vmax.xlane.f32.xlu1 %v774_v38  ;;  %v673_v40 = vpop.f32.mrb[6].mxu0 }
 0x152   :  { %v759_v41 = vmul.f32 0.17677669, %v673_v40  ;;  %v777_v42 = vsel %vm761_vm2, %v758_v37, -inf  ;;  %v2075_v43 = vpop.f32.mrb[7].mxu0  ;;  %v130_v40 = vld [vmem:[#allocation7 + $0x10] sm:$0xff] }
 0x153   :  { %v749_v44 = vpop.f32.mrb[6].mxu1 }
 0x154   :  { %v760_v45 = vmul.f32 0.17677669, %v749_v44  ;;  %v780_v46 = vsel %vm761_vm2, %v759_v41, -inf  ;;  %v2080_v47 = vpop.f32.mrb[7].mxu1  ;;  %v137_v44 = vld [vmem:[#allocation8 + $0x8] sm:$0xff] }
 0x155   :  { %778 = vmax.xlane.f32.xlu1 %v777_v42  ;;  %781 = vmax.xlane.f32.xlu0 %v780_v46 }
 0x156   :  { %v783_v48 = vsel %vm761_vm2, %v760_v45, -inf }
 0x159   :  { %784 = vmax.xlane.f32.xlu1 %v783_v48 }
 0x1d6   :  { %v767_v49 = vpop.xlane.xlu1 %766  ;;  %v764_v50 = vpop.xlane.xlu0 %763 }
 0x1d7   :  { %v787_v51 = vsub.f32 %v754_v20, %v767_v49  ;;  %v786_v52 = vsub.f32 %v753_v19, %v764_v50  ;;  %v132_v49 = vld [vmem:[#allocation7 + $0x20] sm:$0xff]  ;;  %v131_v50 = vld [vmem:[#allocation7 + $0x18] sm:$0xff] }
 0x1d9   :  { %v794_v53 = vmul.f32 1.442695, %v786_v52  ;;  %v796_v54 = vmul.f32 1.442695, %v787_v51  ;;  %v140_v52 = vld [vmem:[#allocation8 + $0x20] sm:$0xff] }
 0x1da   :  { %v770_v55 = vpop.xlane.xlu0 %769 }
 0x1db   :  { %v788_v56 = vsub.f32 %v755_v26, %v770_v55  ;;  %2283 = vpow2.f32 %v794_v53  ;;  %v128_v26 = vld [vmem:[#allocation7] sm:$0xff]  ;;  %v139_v55 = vld [vmem:[#allocation8 + $0x18] sm:$0xff] }
 0x1dc   :  { %2285 = vpow2.f32 %v796_v54  ;;  %2082 = vmatpush3.msra.mxu0 %v128_v26 }
 0x1dd   :  { %v798_v57 = vmul.f32 1.442695, %v788_v56  ;;  %2091 = vmatprep.subr.mxu0 %v2495_v0 }
 0x1de   :  { %v773_v58 = vpop.xlane.xlu0 %772  ;;  %v776_v59 = vpop.xlane.xlu1 %775 }
 0x1df   :  { %2287 = vpow2.f32 %v798_v57  ;;  %v789_v60 = vsub.f32 %v756_v29, %v773_v58  ;;  %v790_v61 = vsub.f32 %v757_v33, %v776_v59  ;;  %v134_v58 = vld [vmem:[#allocation7 + $0x30] sm:$0xff] }
 0x1e1   :  { %v800_v62 = vmul.f32 1.442695, %v789_v60  ;;  %v802_v63 = vmul.f32 1.442695, %v790_v61  ;;  %v133_v61 = vld [vmem:[#allocation7 + $0x28] sm:$0xff] }
 0x1e2   :  { %v779_v1 = vpop.xlane.xlu1 %778  ;;  %v782_v2 = vpop.xlane.xlu0 %781 }
 0x1e3   :  { %2289 = vpow2.f32 %v800_v62  ;;  %v791_v3 = vsub.f32 %v758_v37, %v779_v1  ;;  %v792_v4 = vsub.f32 %v759_v41, %v782_v2  ;;  %v138_v41 = vld [vmem:[#allocation8 + $0x10] sm:$0xff]  ;;  %v141_v62 = vld [vmem:[#allocation8 + $0x28] sm:$0xff] }
 0x1e4   :  { %2291 = vpow2.f32 %v802_v63  ;;  %v142_v2 = vld [vmem:[#allocation8 + $0x30] sm:$0xff] }
 0x1e5   :  { %v804_v5 = vmul.f32 1.442695, %v791_v3  ;;  %v806_v6 = vmul.f32 1.442695, %v792_v4  ;;  %v2284_v7 = vpop.eup %2283 }
 0x1e6   :  { %v785_v8 = vpop.xlane.xlu1 %784  ;;  %v810_v10 = vsel %vm761_vm2, %v2284_v7, 0.0  ;;  %v2286_v11 = vpop.eup %2285 }
 0x1e7   :  { %2293 = vpow2.f32 %v804_v5  ;;  %v793_v9 = vsub.f32 %v760_v45, %v785_v8  ;;  %811 = vadd.xlane.f32.xlu0 %v810_v10  ;;  %v813_v15 = vsel %vm761_vm2, %v2286_v11, 0.0  ;;  %v143_v8 = vld [vmem:[#allocation8 + $0x38] sm:$0xff] }
 0x1e8   :  { %2295 = vpow2.f32 %v806_v6 }
 0x1e9   :  { %v2288_v12 = vpop.eup %2287  ;;  %v808_v13 = vmul.f32 1.442695, %v793_v9 }
 0x1ea   :  { %v816_v14 = vsel %vm761_vm2, %v2288_v12, 0.0 }
 0x1eb   :  { %2297 = vpow2.f32 %v808_v13  ;;  %817 = vadd.xlane.f32.xlu1 %v816_v14  ;;  %814 = vadd.xlane.f32.xlu0 %v813_v15  ;;  %v1445_v14 = vld [vmem:[#allocation10 + $0x10] sm:$0xff]  ;;  %v1446_v15 = vld [vmem:[#allocation10 + $0x18] sm:$0xff] }
 0x1ed   :  { %v2711_v16 = vpop.eup %2289 }
 0x1ee   :  { %v2292_v17 = vpop.eup %2291  ;;  %v819_v18 = vsel %vm761_vm2, %v2711_v16, 0.0 }
 0x1ef   :  { %v822_v19 = vsel %vm761_vm2, %v2292_v17, 0.0  ;;  %820 = vadd.xlane.f32.xlu0 %v819_v18  ;;  %v1537_v18 = vld [vmem:[#allocation10 + $0x28] sm:$0xff] }
 0x1f0   :  { %823 = vadd.xlane.f32.xlu1 %v822_v19 }
 0x1f1   :  { %v2716_v20 = vpop.eup %2293 }
 0x1f2   :  { %v2718_v21 = vpop.eup %2295  ;;  %v825_v22 = vsel %vm761_vm2, %v2716_v20, 0.0 }
 0x1f3   :  { %v828_v23 = vsel %vm761_vm2, %v2718_v21, 0.0 }
 0x1f4   :  { %826 = vadd.xlane.f32.xlu1 %v825_v22  ;;  %829 = vadd.xlane.f32.xlu0 %v828_v23  ;;  %v1538_v23 = vld [vmem:[#allocation10 + $0x30] sm:$0xff] }
 0x1f5   :  { %v2724_v24 = vpop.eup %2297 }
 0x1f6   :  { %v831_v25 = vsel %vm761_vm2, %v2724_v24, 0.0 }
 0x1f8   :  { %832 = vadd.xlane.f32.xlu1 %v831_v25 }
 0x274   :  { %v812_v28 = vpop.xlane.xlu0 %811 }
 0x275   :  { %2299 = vrcp.f32 %v812_v28 }
 0x278   :  { %v818_v29 = vpop.xlane.xlu1 %817  ;;  %v815_v30 = vpop.xlane.xlu0 %814 }
 0x279   :  { %2301 = vrcp.f32 %v818_v29  ;;  %v1623_v29 = vld [vmem:[#allocation10 + $0x40] sm:$0xff] }
 0x27a   :  { %2303 = vrcp.f32 %v815_v30  ;;  %v1624_v30 = vld [vmem:[#allocation10 + $0x48] sm:$0xff] }
 0x27c   :  { %v821_v32 = vpop.xlane.xlu0 %820 }
 0x27d   :  { %v824_v31 = vpop.xlane.xlu1 %823 }
 0x27e   :  { %2305 = vrcp.f32 %v824_v31 }
 0x27f   :  { %2307 = vrcp.f32 %v821_v32  ;;  %v2300_v33 = vpop.eup %2299 }
 0x280   :  { %v835_v35 = vmul.f32 %v2300_v33, %v2284_v7  ;;  %v135_v7 = vld [vmem:[#allocation7 + $0x38] sm:$0xff] }
 0x281   :  { %v827_v36 = vpop.xlane.xlu1 %826  ;;  %v830_v37 = vpop.xlane.xlu0 %829 }
 0x282   :  { %2309 = vrcp.f32 %v827_v36  ;;  %v850_v39 = vadd.f32 %v835_v35, %v136_v34  ;;  %v2216_v34 = vpack.c.bf16 %v1624_v30, %v1623_v29  ;;  %v1625_v35 = vld [vmem:[#allocation10 + $0x50] sm:$0xff]  ;;  %v1626_v36 = vld [vmem:[#allocation10 + $0x58] sm:$0xff] }
 0x283   :  { %v2302_v38 = vpop.eup %2301  ;;  %2311 = vrcp.f32 %v830_v37 }
 0x284   :  { %v2304_v42 = vpop.eup %2303  ;;  %v839_v43 = vmul.f32 %v2302_v38, %v2288_v12  ;;  %2084 = vmatmul.mubr.msk.f32.vlgmr.msra.gmra.mrb[8].mxu0 %vm761_vm2, %v850_v39  ;;  %v1444_v12 = vld [vmem:[#allocation10 + $0x8] sm:$0xff] }
 0x285   :  { %v837_v45 = vmul.f32 %v2304_v42, %v2286_v11  ;;  %v833_v46 = vpop.xlane.xlu1 %832  ;;  %2092 = vmatpush3.msra.mxu0 %v130_v40  ;;  %2093 = vmatprep.mubr.msk.f32.mxu0 %vm2496_vm0, %v2495_v0  ;;  %v1443_v11 = vld [vmem:[#allocation10] sm:$0xff] }
 0x286   :  { %2313 = vrcp.f32 %v833_v46  ;;  %v852_v47 = vadd.f32 %v839_v43, %v138_v41  ;;  %2101 = vmatprep.subr.mxu0 %v2495_v0  ;;  %v2200_v13 = vpack.c.bf16 %v1444_v12, %v1443_v11  ;;  %v2220_v41 = vpack.c.bf16 %v1626_v36, %v1625_v35  ;;  %v1710_v42 = vld [vmem:[#allocation10 + $0x60] sm:$0xff]  ;;  %v1711_v43 = vld [vmem:[#allocation10 + $0x68] sm:$0xff] }
 0x287   :  { %v851_v48 = vadd.f32 %v837_v45, %v137_v44  ;;  %v2224_v46 = vpack.c.bf16 %v1711_v43, %v1710_v42  ;;  %v1957_v11 = vld [vmem:[%s2792_s5] ss:$0 sm:$0xff] }
 0x288   :  { %v2306_v51 = vpop.eup %2305  ;;  %2094 = vmatmul.mubr.msk.f32.vlgmr.msra.gmra.mrb[10].mxu0 %vm761_vm2, %v852_v47  ;;  %v1712_v47 = vld [vmem:[#allocation10 + $0x70] sm:$0xff] }
 0x289   :  { %v2308_v53 = vpop.eup %2307  ;;  %v843_v54 = vmul.f32 %v2306_v51, %v2292_v17  ;;  %2089 = vmatmul.mubr.msk.f32.vlgmr.msra.gmra.mrb[8].mxu1 %vm761_vm2, %v851_v48  ;;  %2102 = vmatpush3.msra.mxu0 %v132_v49  ;;  %v1536_v17 = vld [vmem:[#allocation10 + $0x20] sm:$0xff]  ;;  %v1713_v48 = vld [vmem:[#allocation10 + $0x78] sm:$0xff]  ;;  %v1812_v51 = vld [vmem:[#allocation11 + $0x8] sm:$0xff] }
 0x28a   :  { %v841_v56 = vmul.f32 %v2308_v53, %v2711_v16  ;;  %2097 = vmatpush3.msra.mxu1 %v131_v50  ;;  %2098 = vmatprep.mubr.msk.f32.mxu1 %vm2496_vm0, %v2495_v0  ;;  %v2204_v16 = vpack.c.bf16 %v1446_v15, %v1445_v14  ;;  %v2208_v19 = vpack.c.bf16 %v1537_v18, %v1536_v17  ;;  %v1811_v50 = vld [vmem:[#allocation11] sm:$0xff]  ;;  %v1813_v53 = vld [vmem:[#allocation11 + $0x10] sm:$0xff] }
 0x28b   :  { %2103 = vmatprep.mubr.msk.f32.mxu0 %vm2496_vm0, %v2495_v0  ;;  %v854_v57 = vadd.f32 %v843_v54, %v140_v52  ;;  %2106 = vmatprep.subr.mxu1 %v2495_v0  ;;  %v2228_v49 = vpack.c.bf16 %v1713_v48, %v1712_v47  ;;  %v2232_v52 = vpack.c.bf16 %v1812_v51, %v1811_v50  ;;  %v1814_v54 = vld [vmem:[#allocation11 + $0x18] sm:$0xff] }
 0x28c   :  { %v2310_v59 = vpop.eup %2309  ;;  %v853_v60 = vadd.f32 %v841_v56, %v139_v55  ;;  %2111 = vmatprep.subr.mxu0 %v2495_v0  ;;  %v2236_v55 = vpack.c.bf16 %v1814_v54, %v1813_v53  ;;  %v1815_v56 = vld [vmem:[#allocation11 + $0x20] sm:$0xff] }
 0x28d   :  { %v2312_v63 = vpop.eup %2311  ;;  %v845_v1 = vmul.f32 %v2310_v59, %v2716_v20  ;;  %2104 = vmatmul.mubr.msk.f32.vlgmr.msra.gmra.mrb[12].mxu0 %vm761_vm2, %v854_v57  ;;  %v1816_v57 = vld [vmem:[#allocation11 + $0x28] sm:$0xff]  ;;  %v1817_v59 = vld [vmem:[#allocation11 + $0x30] sm:$0xff] }
 0x28e   :  { %v847_v3 = vmul.f32 %v2312_v63, %v2718_v21  ;;  %2099 = vmatmul.mubr.msk.f32.vlgmr.msra.gmra.mrb[10].mxu1 %vm761_vm2, %v853_v60  ;;  %2112 = vmatpush3.msra.mxu0 %v134_v58  ;;  %v2240_v58 = vpack.c.bf16 %v1816_v57, %v1815_v56  ;;  %v1818_v60 = vld [vmem:[#allocation11 + $0x38] sm:$0xff]  ;;  %v1820_v63 = vld [vmem:[#allocation11 + $0x48] sm:$0xff] }
 0x28f   :  { %2107 = vmatpush3.msra.mxu1 %v133_v61  ;;  %2108 = vmatprep.mubr.msk.f32.mxu1 %vm2496_vm0, %v2495_v0  ;;  %v855_v4 = vadd.f32 %v845_v1, %v141_v62  ;;  %v2244_v61 = vpack.c.bf16 %v1818_v60, %v1817_v59  ;;  %v1819_v62 = vld [vmem:[#allocation11 + $0x40] sm:$0xff] }
 0x290   :  { %v2314_v5 = vpop.eup %2313  ;;  %2113 = vmatprep.mubr.msk.f32.mxu0 %vm2496_vm0, %v2495_v0  ;;  %v856_v6 = vadd.f32 %v847_v3, %v142_v2  ;;  %2116 = vmatprep.subr.mxu1 %v2495_v0  ;;  %v2248_v1 = vpack.c.bf16 %v1820_v63, %v1819_v62  ;;  %v1821_v2 = vld [vmem:[#allocation11 + $0x50] sm:$0xff]  ;;  %v1822_v3 = vld [vmem:[#allocation11 + $0x58] sm:$0xff] }
 0x291   :  { %v849_v9 = vmul.f32 %v2314_v5, %v2724_v24  ;;  %2201 = vmatprep.subr.bf16.mxu0 %v2200_v13  ;;  %v1539_v24 = vld [vmem:[#allocation10 + $0x38] sm:$0xff]  ;;  %v1823_v5 = vld [vmem:[#allocation11 + $0x60] sm:$0xff] }
 0x292   :  { %2109 = vmatmul.mubr.msk.f32.vlgmr.msra.gmra.mrb[12].mxu1 %vm761_vm2, %v855_v4  ;;  %2114 = vmatmul.mubr.msk.f32.vlgmr.msra.gmra.mrb[14].mxu0 %vm761_vm2, %v856_v6  ;;  %v2212_v27 = vpack.c.bf16 %v1539_v24, %v1538_v23  ;;  %v2252_v4 = vpack.c.bf16 %v1822_v3, %v1821_v2  ;;  %v1824_v6 = vld [vmem:[#allocation11 + $0x68] sm:$0xff] }
 0x293   :  { %2117 = vmatpush3.msra.mxu1 %v135_v7  ;;  %2118 = vmatprep.mubr.msk.f32.mxu1 %vm2496_vm0, %v2495_v0  ;;  %v857_v10 = vadd.f32 %v849_v9, %v143_v8  ;;  %v2256_v7 = vpack.c.bf16 %v1824_v6, %v1823_v5  ;;  %v1825_v8 = vld [vmem:[#allocation11 + $0x70] sm:$0xff]  ;;  %v1826_v9 = vld [vmem:[#allocation11 + $0x78] sm:$0xff] }
 0x294   :  { %2203 = vmatpush3.bf16.msra.mxu0 %v2200_v13  ;;  %2233 = vmatprep.subr.bf16.mxu1 %v2232_v52 }
 0x295   :  { %2205 = vmatprep.subr.bf16.mxu0 %v2204_v16 }
 0x296   :  { %2119 = vmatmul.mubr.msk.f32.vlgmr.msra.gmra.mrb[14].mxu1 %vm761_vm2, %v857_v10  ;;  %v2260_v10 = vpack.c.bf16 %v1826_v9, %v1825_v8 }
 0x297   :  { %2235 = vmatpush3.bf16.msra.mxu1 %v2232_v52 }
 0x298   :  { %2207 = vmatpush3.bf16.msra.mxu0 %v2204_v16  ;;  %2237 = vmatprep.subr.bf16.mxu1 %v2236_v55 }
 0x299   :  { %2209 = vmatprep.subr.bf16.mxu0 %v2208_v19 }
 0x29b   :  { %2239 = vmatpush3.bf16.msra.mxu1 %v2236_v55 }
 0x29c   :  { %2241 = vmatprep.subr.bf16.mxu1 %v2240_v58 }
 0x29f   :  { %2243 = vmatpush3.bf16.msra.mxu1 %v2240_v58 }
 0x2a0   :  { %2245 = vmatprep.subr.bf16.mxu1 %v2244_v61 }
 0x2a3   :  { %2247 = vmatpush3.bf16.msra.mxu1 %v2244_v61 }
 0x2a4   :  { %2249 = vmatprep.subr.bf16.mxu1 %v2248_v1 }
 0x2a7   :  { %2251 = vmatpush3.bf16.msra.mxu1 %v2248_v1 }
 0x2a8   :  { %2253 = vmatprep.subr.bf16.mxu1 %v2252_v4 }
 0x2ab   :  { %2255 = vmatpush3.bf16.msra.mxu1 %v2252_v4 }
 0x2ac   :  { %2257 = vmatprep.subr.bf16.mxu1 %v2256_v7 }
 0x2af   :  { %2259 = vmatpush3.bf16.msra.mxu1 %v2256_v7 }
 0x2b0   :  { %2261 = vmatprep.subr.bf16.mxu1 %v2260_v10 }
 0x2b3   :  { %2263 = vmatpush3.bf16.msra.mxu1 %v2260_v10 }
 0x357   :  { %v927_v20 = vpop.f32.mrb[8].mxu0 }
 0x358   :  { %v2085_v21 = vpop.f32.mrb[9].mxu0  ;;  %2129 = vmatprep.mubr.msk.f32.mxu0 %vm144_vm1, %v927_v20 }
 0x35b   :  { %v1073_v22 = vpop.f32.mrb[10].mxu0 }
 0x35c   :  { %v1000_v0 = vpop.f32.mrb[8].mxu1  ;;  %v2095_v26 = vpop.f32.mrb[11].mxu0 }
 0x35d   :  { %v2090_v25 = vpop.f32.mrb[9].mxu1 }
 0x35e   :  { %v1966_v25 = vld [vmem:[%s2794_s7] ss:$0 sm:$0xff] }
 0x360   :  { %v1219_v28 = vpop.f32.mrb[12].mxu0 }
 0x361   :  { %v1146_v31 = vpop.f32.mrb[10].mxu1  ;;  %v2105_v32 = vpop.f32.mrb[13].mxu0  ;;  %2130 = vmatmul.mubr.msk.f32.vlgmr.msra.gmra.mrb[16].mxu0 %vm144_vm1, %v1219_v28 }
 0x362   :  { %v2100_v33 = vpop.f32.mrb[11].mxu1  ;;  %2211 = vmatpush3.bf16.msra.mxu0 %v2208_v19  ;;  %2140 = vmatprep.mubr.msk.f32.mxu0 %vm144_vm1, %v1000_v0 }
 0x363   :  { %2213 = vmatprep.subr.bf16.mxu0 %v2212_v27 }
 0x365   :  { %v1292_v37 = vpop.f32.mrb[12].mxu1  ;;  %v1365_v38 = vpop.f32.mrb[14].mxu0 }
 0x366   :  { %v2110_v39 = vpop.f32.mrb[13].mxu1  ;;  %v2115_v40 = vpop.f32.mrb[15].mxu0  ;;  %2215 = vmatpush3.bf16.msra.mxu0 %v2212_v27 }
 0x367   :  { %2217 = vmatprep.subr.bf16.mxu0 %v2216_v34 }
 0x369   :  { %v1438_v44 = vpop.f32.mrb[14].mxu1  ;;  %2141 = vmatmul.mubr.msk.f32.vlgmr.msra.gmra.mrb[16].mxu0 %vm144_vm1, %v1292_v37 }
 0x36a   :  { %v2120_v45 = vpop.f32.mrb[15].mxu1  ;;  %2219 = vmatpush3.bf16.msra.mxu0 %v2216_v34  ;;  %2151 = vmatprep.mubr.msk.f32.mxu0 %vm144_vm1, %v1073_v22 }
 0x36b   :  { %2221 = vmatprep.subr.bf16.mxu0 %v2220_v41 }
 0x36e   :  { %2223 = vmatpush3.bf16.msra.mxu0 %v2220_v41 }
 0x36f   :  { %2225 = vmatprep.subr.bf16.mxu0 %v2224_v46 }
 0x371   :  { %2152 = vmatmul.mubr.msk.f32.vlgmr.msra.gmra.mrb[16].mxu0 %vm144_vm1, %v1365_v38 }
 0x372   :  { %2227 = vmatpush3.bf16.msra.mxu0 %v2224_v46  ;;  %2162 = vmatprep.mubr.msk.f32.mxu0 %vm144_vm1, %v1146_v31 }
 0x373   :  { %2229 = vmatprep.subr.bf16.mxu0 %v2228_v49 }
 0x376   :  { %2231 = vmatpush3.bf16.msra.mxu0 %v2228_v49 }
 0x379   :  { %2163 = vmatmul.mubr.msk.f32.vlgmr.msra.gmra.mrb[16].mxu0 %vm144_vm1, %v1438_v44 }
 0x44c   :  { %v2164_v12 = vpop.f32.mrb[16].mxu0 }
 0x44d   :  { %v2264_v13 = vadd.f32 %v2164_v12, %v1957_v11  ;;  %v1786_v14 = vpop.f32.mrb[17].mxu0 }
 0x44e   :  { %v2265_v15 = vadd.f32 %v1957_v11, %v1786_v14 }
 0x44f   :  { %v1965_v16 = vmul.f32 -1.442695, %v2264_v13 }
 0x450   :  { %v1964_v17 = vmul.f32 -1.442695, %v2265_v15 }
 0x451   :  { %2315 = vpow2.f32 %v1965_v16 }
 0x452   :  { %2317 = vpow2.f32 %v1964_v17 }
 0x45b   :  { %v2316_v18 = vpop.eup %2315 }
 0x45c   :  { %v2318_v19 = vpop.eup %2317  ;;  %v1804_v20 = vadd.f32 1.0, %v2316_v18 }
 0x45d   :  { %v1803_v21 = vadd.f32 1.0, %v2318_v19 }
 0x45e   :  { %2319 = vrcp.f32 %v1804_v20 }
 0x45f   :  { %2321 = vrcp.f32 %v1803_v21 }
 0x468   :  { %v2320_v0 = vpop.eup %2319 }
 0x469   :  { %v2322_v22 = vpop.eup %2321  ;;  %v1810_v24 = vmul.f32 %v2320_v0, %v2264_v13 }
 0x46a   :  { %v1809_v23 = vmul.f32 %v2322_v22, %v2265_v15 }
 0x46c   :  { %2197 = vmatprep.mubr.f32.mxu1 %v1809_v23 }
 0x46d   :  { %2198 = vmatmul.mubr.f32.vlgmr.msra.gmra.mrb[16].mxu1 %v1810_v24 }
 0x540   :  { %v2199_v26 = vpop.f32.mrb[16].mxu1 }
 0x541   :  { %v1906_v27 = vadd.f32 %v2199_v26, %v1966_v25  ;;  %v1900_v28 = vpop.f32.mrb[17].mxu1 }
 0x542   :  { %v1901_v29 = vadd.f32 %v1966_v25, %v1900_v28 }
 0x543   :  { %1910 = vst [vmem:[#allocation13 + $0x8] sm:$0xff] %v1906_v27 }
 0x544   :  { %1909 = vst [vmem:[#allocation13] sm:$0xff] %v1901_v29 }
 0x545   :  { %2466 = shalt.err (!%p2463_p10)
}
 0x546   :  { %s2467_s7 = scalar_lea.hbm %s2795_s8, 256 }
 0x547   :  { %p2468_p11 = scmp.ne.s32.totalorder %s2795_s8, %s2467_s7  ;;  %p2471_p12 = scmp.lt.u32.totalorder %s2467_s7, %s2795_s8 }
 0x549   :  { %p2473_p13 = pnand %p2471_p12, %p2468_p11 }
 0x54b   :  { %2476 = shalt.err (!%p2473_p13)
}
 0x54c   :  { %1922 = dma.vmem_to_hbm [thread:$0]  %s1917_s13, 256, %s2795_s8, [#allocation4], %s2489_s17, %s2489_s17, %s2490_s18  }
 0x54d   :  { %2485 = dma.done.wait [#allocation4], 256  }
 0x54e   :  { %2486 = vsyncadd [#allocation4], 4294967040 }
 0x54f   :  { %1926 = vsyncpa [#allocation3], 1 }
 0x550   :  { %1927 = vsyncpa [#allocation6], 1 }
 0x551   :  { %1928 = vsyncpa [#allocation9], 1 }
 0x552   :  { %1929 = vsyncpa [#allocation12], 1 }
 0x553   :  { %1930 = vsyncpa [#allocation4], 1 }

</bundles_post_ra>
